<compile_context>
chip_gen: v5e
topology: v5e:2x2
jax: 0.10.0
libtpu: 0.0.40
codegen_flags: <defaults>
</compile_context>

<pallas_src>
import math

import jax
import jax.numpy as jnp
from jax.experimental import pallas as pl
from jax.experimental.pallas import tpu as pltpu


def _round_up(v, m):
    return ((v + m - 1) // m) * m


def _tile_caps(itemsize):
    """Per-dim tile caps (tt_cap, tc_cap); tt becomes the OUTPUT tile's last dim.

    Dtype-aware so every VMEM buffer stays ~1 MiB while each output-DMA row
    (tt * itemsize bytes) stays >= 2 KiB for narrow dtypes.
    """
    if itemsize >= 4:
        return 512, 512            # f32 / i32: 1 MiB tiles
    if itemsize == 2:
        return 1024, 512           # bf16: 1 MiB tiles, 2 KiB output rows
    return 1024, 1024              # i8 / fp8: 1 MiB tiles


def _cost_estimate(n_elems, itemsize):
    # Pure data movement: read + write every element exactly once.
    return pl.CostEstimate(flops=0, transcendentals=0,
                           bytes_accessed=2 * n_elems * itemsize)


# ---------------------------------------------------------------------------
# Kernel bodies
# ---------------------------------------------------------------------------

def _transpose_tile_kernel(x_ref, o_ref):
    # x_ref: (tt, tc), o_ref: (tc, tt); batch dim squeezed by the BlockSpec.
    # Aligned XLU transpose of one tile; the global block permutation is done
    # by the output BlockSpec index_map / DMA.
    o_ref[...] = x_ref[...].T


def _transpose_batched_kernel(x_ref, o_ref):
    # x_ref: (bb, rT, rC), o_ref: (bb, rC, rT) with rT, rC 128-aligned
    # (>= the real T, C); out-of-bounds rows/lanes are dropped by the clipped
    # output writeback, so the padded garbage never reaches HBM.
    o_ref[...] = jnp.swapaxes(x_ref[...], -2, -1)


# ---------------------------------------------------------------------------
# pallas_call wrappers
# ---------------------------------------------------------------------------

_BATCH_TARGET_BYTES = 1 << 20    # ~1 MiB per VMEM buffer in the batched path.


def _transpose_batched_planes(x3):
    """x3: (B, T, C) where one 128-aligned tile covers the whole (T, C) plane."""
    B, T, C = x3.shape
    itemsize = jnp.dtype(x3.dtype).itemsize
    rT, rC = _round_up(T, 128), _round_up(C, 128)
    plane_bytes = rT * rC * itemsize
    bb = max(1, min(B, _BATCH_TARGET_BYTES // plane_bytes))

    return pl.pallas_call(
        _transpose_batched_kernel,
        out_shape=jax.ShapeDtypeStruct((B, C, T), x3.dtype),
        grid_spec=pltpu.PrefetchScalarGridSpec(
            num_scalar_prefetch=0,
            grid=(pl.cdiv(B, bb),),
            in_specs=[pl.BlockSpec((bb, rT, rC), lambda b: (b, 0, 0))],
            out_specs=pl.BlockSpec((bb, rC, rT), lambda b: (b, 0, 0)),
        ),
        compiler_params=pltpu.CompilerParams(
            dimension_semantics=("parallel",)),
        cost_estimate=_cost_estimate(B * T * C, itemsize),
    )(x3)


def _transpose_tiled(x3, tt, tc):
    """x3: (B, T, C); plane tiled with (tt, tc), both multiples of 128."""
    B, T, C = x3.shape
    itemsize = jnp.dtype(x3.dtype).itemsize
    nt, nc = pl.cdiv(T, tt), pl.cdiv(C, tc)

    # Lead with the largest parallel axis so the v7x megacore split across the
    # two TensorCores stays balanced when B is 1 / odd (no-op on v5e / v6e).
    if B >= nt:
        grid = (B, nt, nc)
        in_map = lambda b, i, j: (b, i, j)
        out_map = lambda b, i, j: (b, j, i)      # block-level permutation
    else:
        grid = (nt, nc, B)
        in_map = lambda i, j, b: (b, i, j)
        out_map = lambda i, j, b: (b, j, i)

    # TODO(synk): sweep pipeline_mode=pl.Buffered(3) on in/out specs for v7x
    # (ample VMEM headroom); enable only after on-hardware measurement.
    return pl.pallas_call(
        _transpose_tile_kernel,
        out_shape=jax.ShapeDtypeStruct((B, C, T), x3.dtype),
        grid_spec=pltpu.PrefetchScalarGridSpec(
            num_scalar_prefetch=0,
            grid=grid,
            # Batch dim squeezed (None) -> kernel sees 2-D tiles; edge blocks
            # along T / C are masked by Pallas (cdiv grid).
            in_specs=[pl.BlockSpec((None, tt, tc), in_map)],
            # Output tile last dim = tt (multiple of 128) -> lane-dense stores.
            out_specs=pl.BlockSpec((None, tc, tt), out_map),
        ),
        compiler_params=pltpu.CompilerParams(
            dimension_semantics=("parallel", "parallel", "parallel")),
        cost_estimate=_cost_estimate(B * T * C, itemsize),
    )(x3)


# ---------------------------------------------------------------------------
# Public entry point (mirrors TransposeLast.forward)
# ---------------------------------------------------------------------------

def transpose_last(x, deconstruct_idx=None, transpose_dim=-2):
    if deconstruct_idx is not None:
        x = x[deconstruct_idx]          # glue: mirrors `x = x[self.deconstruct_idx]`
    x = jnp.asarray(x)
    assert x.ndim >= 2, "TransposeLast needs at least 2 dims"

    td = transpose_dim % x.ndim
    if td == x.ndim - 1:
        return x                        # swapping the last dim with itself
    if td != x.ndim - 2:
        # TODO(synk): a general (dim, -1) swap is arbitrary data movement with
        # no clean 2-D tiling; left to XLA (same semantics as the module).
        return jnp.swapaxes(x, td, -1)

    *lead, T, C = x.shape
    B = math.prod(lead) if lead else 1

    # Degenerate shapes: zero-sized tensors, or a size-1 transposed dim (a
    # pure reshape, free in XLA) -- not worth a kernel launch.
    if B == 0 or T <= 1 or C <= 1:
        return jnp.swapaxes(x, -2, -1)

    itemsize = jnp.dtype(x.dtype).itemsize
    cap_t, cap_c = _tile_caps(itemsize)
    x3 = x.reshape(B, T, C)

    if T <= cap_t and C <= cap_c:
        # Whole plane fits in one tile: amortize per-step overhead over the batch.
        out3 = _transpose_batched_planes(x3)
    else:
        tt = min(cap_t, _round_up(T, 128))
        tc = min(cap_c, _round_up(C, 128))
        out3 = _transpose_tiled(x3, tt, tc)

    return out3.reshape(*lead, C, T)


# TODO(synk): when this transpose feeds a matmul/conv, fold the swap into the
# consumer's dot_general dimension_numbers / BlockSpec index_map instead of
# running a standalone kernel -- removes 2*B*T*C*itemsize bytes of pure HBM
# traffic, the largest possible win on every TPU generation.


if __name__ == "__main__":
    key = jax.random.PRNGKey(0)
    k1, k2, k3, k4 = jax.random.split(key, 4)

    # 1) fbank-like (batch, frames, mel-bins): small plane -> batched-plane
    #    Pallas path (batch-blocked, 128-aligned full-plane tile).
    x1 = jax.random.normal(k1, (2, 200, 80), dtype=jnp.float32)
    y1 = jax.block_until_ready(transpose_last(x1))
    assert y1.shape == (2, 80, 200), y1.shape
    assert jnp.array_equal(y1, jnp.swapaxes(x1, -2, -1)), "mismatch (batched path, f32)"

    # 2) longer sequence, non-multiple-of-128 T -> tiled path with a masked
    #    partial edge block along T (exercises the cdiv-grid edge handling).
    x2 = jax.random.normal(k2, (1, 520, 144), dtype=jnp.float32)
    y2 = jax.block_until_ready(transpose_last(x2))
    assert y2.shape == (1, 144, 520), y2.shape
    assert jnp.array_equal(y2, jnp.swapaxes(x2, -2, -1)), "mismatch (tiled path, edge block)"

    # 3) 4-D input (leading dims folded into the batch).
    x3 = jax.random.normal(k3, (2, 4, 16, 32), dtype=jnp.float32)
    y3 = jax.block_until_ready(transpose_last(x3))
    assert y3.shape == (2, 4, 32, 16), y3.shape
    assert jnp.array_equal(y3, jnp.swapaxes(x3, -2, -1)), "mismatch (4-D batched path)"

    # 4) bf16 coverage (dtype-aware tile caps; transpose is bit-exact).
    x4 = jax.random.normal(k4, (2, 200, 80), dtype=jnp.bfloat16)
    y4 = jax.block_until_ready(transpose_last(x4))
    assert y4.shape == (2, 80, 200), y4.shape
    assert jnp.array_equal(y4, jnp.swapaxes(x4, -2, -1)), "mismatch (batched path, bf16)"

    # 5) deconstruct_idx + non-default transpose_dim glue (XLA path).
    y5 = jax.block_until_ready(transpose_last((x1, x2), deconstruct_idx=0, transpose_dim=0))
    assert jnp.array_equal(y5, jnp.swapaxes(x1, 0, -1)), "mismatch (general transpose_dim)"

    print("KERNEL_OK")
</pallas_src>

<mosaic_0001>
module attributes {stable_mosaic.version = 11 : i64} {
  func.func @_transpose_batched_kernel(%arg0: i32, %arg1: memref<2x256x128xf32, #tpu.memory_space<vmem>>, %arg2: memref<2x128x256xf32, #tpu.memory_space<vmem>>) attributes {dimension_semantics = [#tpu.dimension_semantics<parallel>], iteration_bounds = array<i64: 1>, scalar_prefetch = 0 : i64, scratch_operands = 0 : i64, tpu.core_type = #tpu.core_type<tc>, window_params = [{transform_indices = @transform_0, window_bounds = array<i64: 2, 256, 128>}, {transform_indices = @transform_1, window_bounds = array<i64: 2, 128, 256>}]} {
    %c0 = arith.constant 0 : index
    %c0_0 = arith.constant 0 : index
    %c0_1 = arith.constant 0 : index
    %0 = vector.load %arg1[%c0, %c0_0, %c0_1] : memref<2x256x128xf32, #tpu.memory_space<vmem>>, vector<2x256x128xf32>
    %1 = tpu.transpose %0, [0, 2, 1] : vector<2x256x128xf32> -> vector<2x128x256xf32>
    %c0_2 = arith.constant 0 : index
    %c0_3 = arith.constant 0 : index
    %c0_4 = arith.constant 0 : index
    %2 = vector.load %arg2[%c0_2, %c0_3, %c0_4] : memref<2x128x256xf32, #tpu.memory_space<vmem>>, vector<2x128x256xf32>
    tpu.vector_store %arg2[%c0_2, %c0_3, %c0_4], %1 {strides = array<i32>} : memref<2x128x256xf32, #tpu.memory_space<vmem>>, vector<2x128x256xf32>,
    return
  }
  func.func @transform_0(%arg0: i32) -> (i32, i32, i32) {
    %c0_i32 = arith.constant 0 : i32
    %c0_i32_0 = arith.constant 0 : i32
    %c0_i32_1 = arith.constant 0 : i32
    return %arg0, %c0_i32, %c0_i32_0 : i32, i32, i32
  }
  func.func @transform_1(%arg0: i32) -> (i32, i32, i32) {
    %c0_i32 = arith.constant 0 : i32
    %c0_i32_0 = arith.constant 0 : i32
    %c0_i32_1 = arith.constant 0 : i32
    return %arg0, %c0_i32, %c0_i32_0 : i32, i32, i32
  }
}

</mosaic_0001>

<bundles_post_ra>
// kernel: tpu_custom_call.1
= control target key start
LH: loop header
LB: loop body
LE: loop exit
PB: predicated region body
PF: predicated region fallthrough
CT: control target
= control target key end

     0   :  { %s724_s0 = inlined_call_operand.vmem [shape: f32[2,200,80], index: 0, kind: input, shape index: {}]   ;;  %s725_s1 = inlined_call_operand.hbm [shape: f32[2,80,200], index: 1, kind: output, shape index: {}]  }
   0x1   :  { %v135_v0 = vld [vmem:[%s724_s0] sm:$0xff]  ;;  %v137_v1 = vld [vmem:[%s724_s0 + $0x8] sm:$0xff]  ;;  %v139_v2 = vld [vmem:[%s724_s0 + $0x10] sm:$0xff] }
   0x2   :  { %304 = vxpose.xlu0.b32.start [1/16] %v135_v0, 128 }
   0x3   :  { %6 = vsyncpa [#allocation4], 0  ;;  %v141_v3 = vld [vmem:[%s724_s0 + $0x18] sm:$0xff]  ;;  %v143_v4 = vld [vmem:[%s724_s0 + $0x20] sm:$0xff] }
   0x4   :  { %v145_v5 = vld [vmem:[%s724_s0 + $0x28] sm:$0xff]  ;;  %v147_v6 = vld [vmem:[%s724_s0 + $0x30] sm:$0xff]  ;;  %v149_v7 = vld [vmem:[%s724_s0 + $0x38] sm:$0xff] }
   0x5   :  { %v151_v8 = vld [vmem:[%s724_s0 + $0x40] sm:$0xff]  ;;  %v153_v9 = vld [vmem:[%s724_s0 + $0x48] sm:$0xff]  ;;  %v155_v10 = vld [vmem:[%s724_s0 + $0x50] sm:$0xff] }
   0x6   :  { %v157_v11 = vld [vmem:[%s724_s0 + $0x58] sm:$0xff]  ;;  %v159_v12 = vld [vmem:[%s724_s0 + $0x60] sm:$0xff]  ;;  %v161_v13 = vld [vmem:[%s724_s0 + $0x68] sm:$0xff] }
   0x7   :  { %v163_v14 = vld [vmem:[%s724_s0 + $0x70] sm:$0xff]  ;;  %v165_v15 = vld [vmem:[%s724_s0 + $0x78] sm:$0xff]  ;;  %v167_v16 = vld [vmem:[%s724_s0 + $0x80] sm:$0xff] }
   0x8   :  { %336 = vxpose.xlu1.b32.start [1/16] %v167_v16, 128  ;;  %v217_v17 = vld [vmem:[%s724_s0 + $0x148] sm:$0xff]  ;;  %v219_v19 = vld [vmem:[%s724_s0 + $0x150] sm:$0xff]  ;;  %v221_v22 = vld [vmem:[%s724_s0 + $0x158] sm:$0xff] }
   0x9   :  { %v169_v18 = vld [vmem:[%s724_s0 + $0x88] sm:$0xff]  ;;  %v171_v21 = vld [vmem:[%s724_s0 + $0x90] sm:$0xff]  ;;  %v173_v24 = vld [vmem:[%s724_s0 + $0x98] sm:$0xff] }
   0xa   :  { %305 = vxpose.xlu0.b32.cont [2/16] %v137_v1, 128  ;;  %v185_v20 = vld [vmem:[%s724_s0 + $0xc8] sm:$0xff]  ;;  %v187_v23 = vld [vmem:[%s724_s0 + $0xd0] sm:$0xff]  ;;  %v223_v25 = vld [vmem:[%s724_s0 + $0x160] sm:$0xff] }
   0xb   :  { %368 = vxpose.xlu2.b32.start [1/16] %v185_v20, 128  ;;  %v189_v26 = vld [vmem:[%s724_s0 + $0xd8] sm:$0xff]  ;;  %v175_v27 = vld [vmem:[%s724_s0 + $0xa0] sm:$0xff]  ;;  %v225_v28 = vld [vmem:[%s724_s0 + $0x168] sm:$0xff] }
   0xc   :  { %v191_v29 = vld [vmem:[%s724_s0 + $0xe0] sm:$0xff]  ;;  %v177_v30 = vld [vmem:[%s724_s0 + $0xa8] sm:$0xff]  ;;  %v227_v31 = vld [vmem:[%s724_s0 + $0x170] sm:$0xff] }
   0xd   :  { %v193_v32 = vld [vmem:[%s724_s0 + $0xe8] sm:$0xff]  ;;  %v179_v33 = vld [vmem:[%s724_s0 + $0xb0] sm:$0xff]  ;;  %v229_v34 = vld [vmem:[%s724_s0 + $0x178] sm:$0xff] }
   0xe   :  { %v195_v35 = vld [vmem:[%s724_s0 + $0xf0] sm:$0xff]  ;;  %v181_v36 = vld [vmem:[%s724_s0 + $0xb8] sm:$0xff]  ;;  %v231_v37 = vld [vmem:[%s724_s0 + $0x180] sm:$0xff] }
   0xf   :  { %v197_v38 = vld [vmem:[%s724_s0 + $0xf8] sm:$0xff]  ;;  %v183_v39 = vld [vmem:[%s724_s0 + $0xc0] sm:$0xff]  ;;  %v233_v40 = vld [vmem:[%s724_s0 + $0x188] sm:$0xff] }
  0x10   :  { %337 = vxpose.xlu1.b32.cont [2/16] %v169_v18, 128  ;;  %v199_v41 = vld [vmem:[%s724_s0 + $0x100] sm:$0xff]  ;;  %v265_v43 = vld [vmem:[#allocation2 + $0xa8] sm:$0xff]  ;;  %v203_v47 = vld [vmem:[%s724_s0 + $0x110] sm:$0xff] }
  0x11   :  { %v201_v44 = vld [vmem:[%s724_s0 + $0x108] sm:$0xff]  ;;  %v205_v50 = vld [vmem:[%s724_s0 + $0x118] sm:$0xff]  ;;  %v268_v52 = vld [vmem:[#allocation2 + $0x1b0] sm:$0xff] }
  0x12   :  { %306 = vxpose.xlu0.b32.cont [3/16] %v139_v2, 128  ;;  %v266_v46 = vld [vmem:[#allocation2 + $0x1c8] sm:$0xff]  ;;  %v207_v53 = vld [vmem:[%s724_s0 + $0x120] sm:$0xff]  ;;  %v297_v55 = vld [vmem:[#allocation2 + $0x38] sm:$0xff] }
  0x13   :  { %369 = vxpose.xlu2.b32.cont [2/16] %v187_v23, 128  ;;  %v267_v49 = vld [vmem:[#allocation2 + $0x1a8] sm:$0xff]  ;;  %v298_v59 = vld [vmem:[#allocation2 + $0xc0] sm:$0xff]  ;;  %v211_v61 = vld [vmem:[%s724_s0 + $0x130] sm:$0xff] }
  0x14   :  { %v269_v56 = vld [vmem:[#allocation2 + $0x68] sm:$0xff]  ;;  %v299_v63 = vld [vmem:[#allocation2 + $0xf8] sm:$0xff]  ;;  %v271_v0 = vld [vmem:[#allocation2 + $0xd0] sm:$0xff] }
  0x15   :  { %v209_v57 = vld [vmem:[%s724_s0 + $0x128] sm:$0xff]  ;;  %v213_v1 = vld [vmem:[%s724_s0 + $0x138] sm:$0xff] }
  0x16   :  { %v270_v60 = vld [vmem:[#allocation2 + $0xc8] sm:$0xff] }
  0x18   :  { %338 = vxpose.xlu1.b32.cont [3/16] %v171_v21, 128 }
  0x1a   :  { %307 = vxpose.xlu0.b32.cont [4/16] %v141_v3, 128  ;;  %v300_v3 = vld [vmem:[#allocation2 + $0x190] sm:$0xff] }
  0x1b   :  { %370 = vxpose.xlu2.b32.cont [3/16] %v189_v26, 128 }
  0x20   :  { %339 = vxpose.xlu1.b32.cont [4/16] %v173_v24, 128 }
  0x22   :  { %308 = vxpose.xlu0.b32.cont [5/16] %v143_v4, 128  ;;  %v215_v4 = vld [vmem:[%s724_s0 + $0x140] sm:$0xff] }
  0x23   :  { %371 = vxpose.xlu2.b32.cont [4/16] %v191_v29, 128 }
  0x28   :  { %340 = vxpose.xlu1.b32.cont [5/16] %v175_v27, 128 }
  0x2a   :  { %309 = vxpose.xlu0.b32.cont [6/16] %v145_v5, 128 }
  0x2b   :  { %372 = vxpose.xlu2.b32.cont [5/16] %v193_v32, 128 }
  0x30   :  { %341 = vxpose.xlu1.b32.cont [6/16] %v177_v30, 128 }
  0x32   :  { %310 = vxpose.xlu0.b32.cont [7/16] %v147_v6, 128  ;;  %v301_v6 = vld [vmem:[#allocation2 + $0x10] sm:$0xff] }
  0x33   :  { %373 = vxpose.xlu2.b32.cont [6/16] %v195_v35, 128 }
  0x38   :  { %342 = vxpose.xlu1.b32.cont [7/16] %v179_v33, 128 }
  0x3a   :  { %311 = vxpose.xlu0.b32.cont [8/16] %v149_v7, 128 }
  0x3b   :  { %374 = vxpose.xlu2.b32.cont [7/16] %v197_v38, 128 }
  0x40   :  { %343 = vxpose.xlu1.b32.cont [8/16] %v181_v36, 128 }
  0x42   :  { %312 = vxpose.xlu0.b32.cont [9/16] %v151_v8, 128  ;;  %v302_v8 = vld [vmem:[#allocation2 + $0x58] sm:$0xff] }
  0x43   :  { %375 = vxpose.xlu2.b32.cont [8/16] %v199_v41, 128 }
  0x48   :  { %344 = vxpose.xlu1.b32.cont [9/16] %v183_v39, 128 }
  0x4a   :  { %313 = vxpose.xlu0.b32.cont [10/16] %v153_v9, 128 }
  0x4b   :  { %376 = vxpose.xlu2.b32.cont [9/16] %v201_v44, 128 }
  0x50   :  { %345 = vxpose.xlu1.b32.cont [10/16] %v265_v43, 128 }
  0x52   :  { %314 = vxpose.xlu0.b32.cont [11/16] %v155_v10, 128  ;;  %v303_v10 = vld [vmem:[#allocation2 + $0xa0] sm:$0xff] }
  0x53   :  { %377 = vxpose.xlu2.b32.cont [10/16] %v203_v47, 128 }
  0x58   :  { %346 = vxpose.xlu1.b32.cont [11/16] %v266_v46, 128 }
  0x5a   :  { %315 = vxpose.xlu0.b32.cont [12/16] %v157_v11, 128 }
  0x5b   :  { %378 = vxpose.xlu2.b32.cont [11/16] %v205_v50, 128 }
  0x60   :  { %347 = vxpose.xlu1.b32.cont [12/16] %v267_v49, 128 }
  0x62   :  { %316 = vxpose.xlu0.b32.cont [13/16] %v159_v12, 128 }
  0x63   :  { %379 = vxpose.xlu2.b32.cont [12/16] %v207_v53, 128 }
  0x68   :  { %348 = vxpose.xlu1.b32.cont [13/16] %v268_v52, 128 }
  0x6a   :  { %317 = vxpose.xlu0.b32.cont [14/16] %v161_v13, 128 }
  0x6b   :  { %380 = vxpose.xlu2.b32.cont [13/16] %v209_v57, 128 }
  0x70   :  { %349 = vxpose.xlu1.b32.cont [14/16] %v269_v56, 128 }
  0x72   :  { %318 = vxpose.xlu0.b32.cont [15/16] %v163_v14, 128 }
  0x73   :  { %381 = vxpose.xlu2.b32.cont [14/16] %v211_v61, 128 }
  0x78   :  { %350 = vxpose.xlu1.b32.cont [15/16] %v270_v60, 128 }
  0x7a   :  { %319 = vxpose.xlu0.b32.end [16/16] %v165_v15, 128 }
  0x7b   :  { %382 = vxpose.xlu2.b32.cont [15/16] %v213_v1, 128 }
  0x80   :  { %351 = vxpose.xlu1.b32.end [16/16] %v271_v0, 128 }
  0x82   :  { %400 = vxpose.xlu0.b32.start [1/16] %v217_v17, 128 }
  0x83   :  { %383 = vxpose.xlu2.b32.end [16/16] %v215_v4, 128 }
  0x8a   :  { %401 = vxpose.xlu0.b32.cont [2/16] %v219_v19, 128 }
  0x92   :  { %402 = vxpose.xlu0.b32.cont [3/16] %v221_v22, 128 }
  0x9a   :  { %403 = vxpose.xlu0.b32.cont [4/16] %v223_v25, 128 }
  0xa2   :  { %404 = vxpose.xlu0.b32.cont [5/16] %v225_v28, 128 }
  0xa4   :  { %v384_v12 = vpop.trf.xlu2 }
  0xa5   :  { %464 = vst [vmem:[#allocation3 + $0x100] sm:$0xff] %v384_v12 }
  0xa6   :  { %v320_v42 = vpop.trf.xlu0 }
  0xa7   :  { %432 = vst [vmem:[#allocation3] sm:$0xff] %v320_v42 }
  0xaa   :  { %405 = vxpose.xlu0.b32.cont [6/16] %v227_v31, 128 }
  0xac   :  { %v352_v13 = vpop.trf.xlu1  ;;  %v385_v15 = vpop.trf.xlu2 }
  0xad   :  { %433 = vst [vmem:[#allocation3 + $0x8] sm:$0xff] %v352_v13 }
  0xae   :  { %v321_v45 = vpop.trf.xlu0  ;;  %466 = vst [vmem:[#allocation3 + $0x110] sm:$0xff] %v385_v15 }
  0xaf   :  { %434 = vst [vmem:[#allocation3 + $0x10] sm:$0xff] %v321_v45 }
  0xb2   :  { %406 = vxpose.xlu0.b32.cont [7/16] %v229_v34, 128 }
  0xb4   :  { %v353_v16 = vpop.trf.xlu1  ;;  %v386_v18 = vpop.trf.xlu2 }
  0xb5   :  { %435 = vst [vmem:[#allocation3 + $0x18] sm:$0xff] %v353_v16 }
  0xb6   :  { %v322_v48 = vpop.trf.xlu0  ;;  %468 = vst [vmem:[#allocation3 + $0x120] sm:$0xff] %v386_v18 }
  0xb7   :  { %436 = vst [vmem:[#allocation3 + $0x20] sm:$0xff] %v322_v48 }
  0xba   :  { %407 = vxpose.xlu0.b32.cont [8/16] %v231_v37, 128 }
  0xbc   :  { %v354_v19 = vpop.trf.xlu1  ;;  %v387_v21 = vpop.trf.xlu2 }
  0xbd   :  { %437 = vst [vmem:[#allocation3 + $0x28] sm:$0xff] %v354_v19 }
  0xbe   :  { %v323_v51 = vpop.trf.xlu0  ;;  %470 = vst [vmem:[#allocation3 + $0x130] sm:$0xff] %v387_v21 }
  0xbf   :  { %438 = vst [vmem:[#allocation3 + $0x30] sm:$0xff] %v323_v51 }
  0xc2   :  { %408 = vxpose.xlu0.b32.cont [9/16] %v233_v40, 128 }
  0xc4   :  { %v355_v22 = vpop.trf.xlu1  ;;  %v388_v24 = vpop.trf.xlu2 }
  0xc5   :  { %439 = vst [vmem:[#allocation3 + $0x38] sm:$0xff] %v355_v22 }
  0xc6   :  { %v324_v54 = vpop.trf.xlu0  ;;  %472 = vst [vmem:[#allocation3 + $0x140] sm:$0xff] %v388_v24 }
  0xc7   :  { %440 = vst [vmem:[#allocation3 + $0x40] sm:$0xff] %v324_v54 }
  0xca   :  { %409 = vxpose.xlu0.b32.cont [10/16] %v297_v55, 128 }
  0xcc   :  { %v356_v25 = vpop.trf.xlu1  ;;  %v389_v27 = vpop.trf.xlu2 }
  0xcd   :  { %441 = vst [vmem:[#allocation3 + $0x48] sm:$0xff] %v356_v25 }
  0xce   :  { %v325_v58 = vpop.trf.xlu0  ;;  %474 = vst [vmem:[#allocation3 + $0x150] sm:$0xff] %v389_v27 }
  0xcf   :  { %442 = vst [vmem:[#allocation3 + $0x50] sm:$0xff] %v325_v58 }
  0xd2   :  { %410 = vxpose.xlu0.b32.cont [11/16] %v298_v59, 128 }
  0xd4   :  { %v357_v28 = vpop.trf.xlu1  ;;  %v390_v30 = vpop.trf.xlu2 }
  0xd5   :  { %443 = vst [vmem:[#allocation3 + $0x58] sm:$0xff] %v357_v28 }
  0xd6   :  { %v326_v62 = vpop.trf.xlu0  ;;  %476 = vst [vmem:[#allocation3 + $0x160] sm:$0xff] %v390_v30 }
  0xd7   :  { %444 = vst [vmem:[#allocation3 + $0x60] sm:$0xff] %v326_v62 }
  0xda   :  { %411 = vxpose.xlu0.b32.cont [12/16] %v299_v63, 128 }
  0xdc   :  { %v358_v31 = vpop.trf.xlu1  ;;  %v391_v33 = vpop.trf.xlu2 }
  0xdd   :  { %445 = vst [vmem:[#allocation3 + $0x68] sm:$0xff] %v358_v31 }
  0xde   :  { %v327_v2 = vpop.trf.xlu0  ;;  %478 = vst [vmem:[#allocation3 + $0x170] sm:$0xff] %v391_v33 }
  0xdf   :  { %446 = vst [vmem:[#allocation3 + $0x70] sm:$0xff] %v327_v2 }
  0xe2   :  { %412 = vxpose.xlu0.b32.cont [13/16] %v300_v3, 128 }
  0xe4   :  { %v359_v34 = vpop.trf.xlu1  ;;  %v392_v36 = vpop.trf.xlu2 }
  0xe5   :  { %447 = vst [vmem:[#allocation3 + $0x78] sm:$0xff] %v359_v34 }
  0xe6   :  { %v328_v5 = vpop.trf.xlu0  ;;  %480 = vst [vmem:[#allocation3 + $0x180] sm:$0xff] %v392_v36 }
  0xe7   :  { %448 = vst [vmem:[#allocation3 + $0x80] sm:$0xff] %v328_v5 }
  0xea   :  { %413 = vxpose.xlu0.b32.cont [14/16] %v301_v6, 128 }
  0xec   :  { %v360_v37 = vpop.trf.xlu1  ;;  %v393_v39 = vpop.trf.xlu2 }
  0xed   :  { %449 = vst [vmem:[#allocation3 + $0x88] sm:$0xff] %v360_v37 }
  0xee   :  { %v329_v7 = vpop.trf.xlu0  ;;  %482 = vst [vmem:[#allocation3 + $0x190] sm:$0xff] %v393_v39 }
  0xef   :  { %450 = vst [vmem:[#allocation3 + $0x90] sm:$0xff] %v329_v7 }
  0xf2   :  { %414 = vxpose.xlu0.b32.cont [15/16] %v302_v8, 128 }
  0xf4   :  { %v361_v40 = vpop.trf.xlu1  ;;  %v394_v42 = vpop.trf.xlu2 }
  0xf5   :  { %451 = vst [vmem:[#allocation3 + $0x98] sm:$0xff] %v361_v40 }
  0xf6   :  { %v330_v9 = vpop.trf.xlu0  ;;  %484 = vst [vmem:[#allocation3 + $0x1a0] sm:$0xff] %v394_v42 }
  0xf7   :  { %452 = vst [vmem:[#allocation3 + $0xa0] sm:$0xff] %v330_v9 }
  0xfa   :  { %415 = vxpose.xlu0.b32.end [16/16] %v303_v10, 128 }
  0xfc   :  { %v362_v43 = vpop.trf.xlu1  ;;  %v395_v45 = vpop.trf.xlu2 }
  0xfd   :  { %453 = vst [vmem:[#allocation3 + $0xa8] sm:$0xff] %v362_v43 }
  0xfe   :  { %v331_v11 = vpop.trf.xlu0  ;;  %486 = vst [vmem:[#allocation3 + $0x1b0] sm:$0xff] %v395_v45 }
  0xff   :  { %454 = vst [vmem:[#allocation3 + $0xb0] sm:$0xff] %v331_v11 }
 0x104   :  { %v363_v46 = vpop.trf.xlu1  ;;  %v396_v48 = vpop.trf.xlu2 }
 0x105   :  { %455 = vst [vmem:[#allocation3 + $0xb8] sm:$0xff] %v363_v46 }
 0x106   :  { %v332_v14 = vpop.trf.xlu0  ;;  %488 = vst [vmem:[#allocation3 + $0x1c0] sm:$0xff] %v396_v48 }
 0x107   :  { %456 = vst [vmem:[#allocation3 + $0xc0] sm:$0xff] %v332_v14 }
 0x10c   :  { %v364_v49 = vpop.trf.xlu1  ;;  %v397_v51 = vpop.trf.xlu2 }
 0x10d   :  { %457 = vst [vmem:[#allocation3 + $0xc8] sm:$0xff] %v364_v49 }
 0x10e   :  { %v333_v17 = vpop.trf.xlu0  ;;  %490 = vst [vmem:[#allocation3 + $0x1d0] sm:$0xff] %v397_v51 }
 0x10f   :  { %458 = vst [vmem:[#allocation3 + $0xd0] sm:$0xff] %v333_v17 }
 0x114   :  { %v365_v52 = vpop.trf.xlu1  ;;  %v398_v54 = vpop.trf.xlu2 }
 0x115   :  { %459 = vst [vmem:[#allocation3 + $0xd8] sm:$0xff] %v365_v52 }
 0x116   :  { %v334_v20 = vpop.trf.xlu0  ;;  %492 = vst [vmem:[#allocation3 + $0x1e0] sm:$0xff] %v398_v54 }
 0x117   :  { %460 = vst [vmem:[#allocation3 + $0xe0] sm:$0xff] %v334_v20 }
 0x11c   :  { %v366_v55 = vpop.trf.xlu1  ;;  %v399_v57 = vpop.trf.xlu2 }
 0x11d   :  { %461 = vst [vmem:[#allocation3 + $0xe8] sm:$0xff] %v366_v55 }
 0x11e   :  { %v335_v23 = vpop.trf.xlu0  ;;  %494 = vst [vmem:[#allocation3 + $0x1f0] sm:$0xff] %v399_v57 }
 0x11f   :  { %462 = vst [vmem:[#allocation3 + $0xf0] sm:$0xff] %v335_v23 }
 0x124   :  { %v367_v58 = vpop.trf.xlu1 }
 0x125   :  { %463 = vst [vmem:[#allocation3 + $0xf8] sm:$0xff] %v367_v58 }
 0x126   :  { %v416_v26 = vpop.trf.xlu0 }
 0x127   :  { %465 = vst [vmem:[#allocation3 + $0x108] sm:$0xff] %v416_v26 }
 0x12e   :  { %v417_v29 = vpop.trf.xlu0 }
 0x12f   :  { %467 = vst [vmem:[#allocation3 + $0x118] sm:$0xff] %v417_v29 }
 0x136   :  { %v418_v32 = vpop.trf.xlu0 }
 0x137   :  { %469 = vst [vmem:[#allocation3 + $0x128] sm:$0xff] %v418_v32 }
 0x13e   :  { %v419_v35 = vpop.trf.xlu0 }
 0x13f   :  { %471 = vst [vmem:[#allocation3 + $0x138] sm:$0xff] %v419_v35 }
 0x146   :  { %v420_v38 = vpop.trf.xlu0 }
 0x147   :  { %473 = vst [vmem:[#allocation3 + $0x148] sm:$0xff] %v420_v38 }
 0x14e   :  { %v421_v41 = vpop.trf.xlu0 }
 0x14f   :  { %475 = vst [vmem:[#allocation3 + $0x158] sm:$0xff] %v421_v41 }
 0x156   :  { %v422_v44 = vpop.trf.xlu0 }
 0x157   :  { %477 = vst [vmem:[#allocation3 + $0x168] sm:$0xff] %v422_v44 }
 0x15e   :  { %v423_v47 = vpop.trf.xlu0 }
 0x15f   :  { %479 = vst [vmem:[#allocation3 + $0x178] sm:$0xff] %v423_v47 }
 0x166   :  { %v424_v50 = vpop.trf.xlu0 }
 0x167   :  { %481 = vst [vmem:[#allocation3 + $0x188] sm:$0xff] %v424_v50 }
 0x16e   :  { %v425_v53 = vpop.trf.xlu0 }
 0x16f   :  { %483 = vst [vmem:[#allocation3 + $0x198] sm:$0xff] %v425_v53 }
 0x176   :  { %v426_v56 = vpop.trf.xlu0 }
 0x177   :  { %485 = vst [vmem:[#allocation3 + $0x1a8] sm:$0xff] %v426_v56 }
 0x17e   :  { %v427_v59 = vpop.trf.xlu0 }
 0x17f   :  { %487 = vst [vmem:[#allocation3 + $0x1b8] sm:$0xff] %v427_v59 }
 0x186   :  { %v428_v60 = vpop.trf.xlu0 }
 0x187   :  { %489 = vst [vmem:[#allocation3 + $0x1c8] sm:$0xff] %v428_v60 }
 0x18e   :  { %v429_v61 = vpop.trf.xlu0 }
 0x18f   :  { %491 = vst [vmem:[#allocation3 + $0x1d8] sm:$0xff] %v429_v61 }
 0x196   :  { %v430_v62 = vpop.trf.xlu0 }
 0x197   :  { %493 = vst [vmem:[#allocation3 + $0x1e8] sm:$0xff] %v430_v62 }
 0x19e   :  { %v431_v63 = vpop.trf.xlu0 }
 0x19f   :  { %495 = vst [vmem:[#allocation3 + $0x1f8] sm:$0xff] %v431_v63 }
 0x1a0   :  { %499 = vsyncadd [#allocation4], 3072  ;;  %s512_s20 = sshll.u32 %s725_s1, 4  ;;  %s552_s21 = smov [#allocation3]   ;;  %s513_s20 = int_to_ptr.hbm [resolvable:$true] %s512_s20 }
 0x1a1   :  { %s510_s22 = sshll.u32 %s552_s21, 4  ;;  %s553_s23 = smov 4096   ;;  %s511_s22 = int_to_ptr.vmem [resolvable:$true] %s510_s22 }
 0x1a2   :  { %519 = sst [smem:[#allocation6]] %s553_s23  ;;  %s554_s24 = smov 2560  }
 0x1a3   :  { %521 = sst [smem:[#allocation6 + $0x1]] %s554_s24  ;;  %s555_s25 = smov 10  }
 0x1a4   :  { %523 = sst [smem:[#allocation6 + $0x2]] %s555_s25  ;;  %s556_s26 = smov 256  }
 0x1a5   :  { %525 = sst [smem:[#allocation6 + $0x3]] %s556_s26  ;;  %s557_s27 = smov 16  }
 0x1a6   :  { %527 = sst [smem:[#allocation6 + $0x4]] %s556_s26  ;;  %s558_s28 = smov [#allocation4]  }
 0x1a7   :  { %529 = sst [smem:[#allocation6 + $0x5]] %s557_s27  ;;  %s559_s29 = smov [#allocation5]  }
 0x1a8   :  { %s560_s30 = smov 0  }
 0x1a9   :  { %531 = dma.general %s511_s22, 5120, %s513_s20, %s558_s28, %s559_s29, [#allocation6], %s560_s30, 0  }
 0x1aa   :  { %550 = dma.done.wait [#allocation4], 8192  }
 0x1ab   :  { %551 = vsyncadd [#allocation4], 4294959104 }
 0x1ac   :  { %536 = vsyncpa [#allocation4], 1 }

</bundles_post_ra>
